<compile_context>
chip_gen: v6e
topology: v6e:2x2x1
jax: 0.10.0
libtpu: 0.0.40
codegen_flags: <defaults>
</compile_context>

<pallas_src>
import functools

import jax
import jax.numpy as jnp
from jax.experimental import pallas as pl
from jax.experimental.pallas import tpu as pltpu


def _round_up(x, m):
    return ((x + m - 1) // m) * m


def _mse_partial_kernel(pred_ref, prof_ref, out_ref, *, batch, tile_b, need_mask):
    """One grid step: partial sum of (pred - target)^2 over tile_b batch rows,
    folded over the leading batch axis onto a single (P, L) slab."""
    pred = pred_ref[...].astype(jnp.float32)          # (tile_b, P, L)
    tgt = prof_ref[:, 0, :, :].astype(jnp.float32)    # (tile_b, P, L)
    d = pred - tgt
    if need_mask:
        # Last batch block may run past B: zero the out-of-range rows
        # (done on the diff, so any garbage/NaN in padded rows is discarded).
        i = pl.program_id(0)
        b_idx = i * tile_b + jax.lax.broadcasted_iota(jnp.int32, d.shape, 0)
        d = jnp.where(b_idx < batch, d, 0.0)
    # Reduction over the leading (non-minor) axis: element-wise VPU adds.
    out_ref[...] = jnp.sum(d * d, axis=0, keepdims=True)


def my_mse_loss(
    profiles_predicted_tensor,  # [B, P, L]
    profiles_tensor,            # [B, T, P, L]
    actuators_tensor,           # [B, T_act, A]
    parameters_tensor,          # [B, T_par, K]
    profiles=None,              # unused (mirrors PyTorch signature)
    actuators=None,             # unused
    parameters=None,            # unused
):
    lookahead = actuators_tensor.shape[1] - parameters_tensor.shape[1]
    B, P, L = profiles_predicted_tensor.shape
    T = profiles_tensor.shape[1]
    # profiles_tensor[:, -lookahead]; matches Python negative-index semantics
    # (lookahead == 0 -> index 0), index is static at trace time.
    t_idx = (-lookahead) % T

    # Size tile_b from the VMEM-padded footprint of one batch row (f32,
    # (8,128) tile padding), keeping 2 inputs x 2 pipeline buffers <= ~8 MiB.
    padded_row_bytes = _round_up(P, 8) * _round_up(L, 128) * 4
    budget_bytes = 8 * 1024 * 1024
    tile_b = max(1, min(B, budget_bytes // (4 * padded_row_bytes)))
    num_blocks = pl.cdiv(B, tile_b)
    # TODO(synk): if a single batch row ever exceeds the VMEM budget, add a
    # second grid axis tiling P (multiples of 8) / L (multiples of 128).

    kernel = functools.partial(
        _mse_partial_kernel,
        batch=B,
        tile_b=tile_b,
        need_mask=(B % tile_b != 0),
    )

    partials = pl.pallas_call(
        kernel,
        out_shape=jax.ShapeDtypeStruct((num_blocks, P, L), jnp.float32),
        grid_spec=pltpu.PrefetchScalarGridSpec(
            num_scalar_prefetch=0,
            grid=(num_blocks,),
            in_specs=[
                # Predicted profiles: contiguous (tile_b, P, L) blocks.
                pl.BlockSpec((tile_b, P, L), lambda i: (i, 0, 0)),
                # Full profiles tensor: fused time-slice via index_map
                # (block size 1 along T, constant block index t_idx).
                pl.BlockSpec((tile_b, 1, P, L), lambda i: (i, t_idx, 0, 0)),
            ],
            out_specs=pl.BlockSpec((1, P, L), lambda i: (i, 0, 0)),
        ),
        compiler_params=pltpu.CompilerParams(
            dimension_semantics=("parallel",),
            vmem_limit_bytes=32 * 1024 * 1024,
        ),
    )(profiles_predicted_tensor, profiles_tensor)

    # Tiny (num_blocks, P, L) tensor: finish the reduction in plain JAX.
    n = B * P * L
    return jnp.sum(partials) / jnp.float32(n)


if __name__ == "__main__":
    key = jax.random.PRNGKey(0)
    k1, k2, k3, k4 = jax.random.split(key, 4)

    B, T, P, L = 2, 8, 4, 16
    T_act, A = 10, 3
    T_par, K = 7, 3   # lookahead = 10 - 7 = 3  -> target = profiles_tensor[:, -3]

    profiles_predicted = jax.random.normal(k1, (B, P, L), dtype=jnp.float32)
    profiles_tensor = jax.random.normal(k2, (B, T, P, L), dtype=jnp.float32)
    actuators_tensor = jax.random.normal(k3, (B, T_act, A), dtype=jnp.float32)
    parameters_tensor = jax.random.normal(k4, (B, T_par, K), dtype=jnp.float32)

    loss = my_mse_loss(
        profiles_predicted,
        profiles_tensor,
        actuators_tensor,
        parameters_tensor,
        None, None, None,
    )
    loss = jax.block_until_ready(loss)

    # sanity check against plain-JAX reference
    lookahead = T_act - T_par
    ref = jnp.mean(
        (profiles_predicted - profiles_tensor[:, -lookahead, :, :]) ** 2
    )
    assert jnp.allclose(loss, ref, rtol=1e-6, atol=1e-6), (loss, ref)

    print("KERNEL_OK")
</pallas_src>

<mosaic_0001>
module attributes {stable_mosaic.version = 11 : i64} {
  func.func @_mse_partial_kernel(%arg0: i32, %arg1: memref<2x4x16xf32, #tpu.memory_space<vmem>>, %arg2: memref<2x1x4x16xf32, #tpu.memory_space<vmem>>, %arg3: memref<1x4x16xf32, #tpu.memory_space<vmem>>) attributes {dimension_semantics = [#tpu.dimension_semantics<parallel>], iteration_bounds = array<i64: 1>, scalar_prefetch = 0 : i64, scratch_operands = 0 : i64, tpu.core_type = #tpu.core_type<tc>, window_params = [{transform_indices = @transform_0, window_bounds = array<i64: 2, 4, 16>}, {transform_indices = @transform_1, window_bounds = array<i64: 2, 1, 4, 16>}, {transform_indices = @transform_2, window_bounds = array<i64: 1, 4, 16>}]} {
    %c0 = arith.constant 0 : index
    %c0_0 = arith.constant 0 : index
    %c0_1 = arith.constant 0 : index
    %0 = vector.load %arg1[%c0, %c0_0, %c0_1] : memref<2x4x16xf32, #tpu.memory_space<vmem>>, vector<2x4x16xf32>
    %c0_2 = arith.constant 0 : index
    %c0_3 = arith.constant 0 : index
    %c0_4 = arith.constant 0 : index
    %c0_5 = arith.constant 0 : index
    %1 = vector.load %arg2[%c0_2, %c0_3, %c0_4, %c0_5] : memref<2x1x4x16xf32, #tpu.memory_space<vmem>>, vector<2x1x4x16xf32>
    %2 = vector.shape_cast %1 : vector<2x1x4x16xf32> to vector<2x4x16xf32>
    %3 = arith.subf %0, %2 : vector<2x4x16xf32>
    %4 = arith.mulf %3, %3 : vector<2x4x16xf32>
    %cst = arith.constant dense<0.000000e+00> : vector<4x16xf32>
    %5 = vector.multi_reduction <add>, %4, %cst [0] : vector<2x4x16xf32> to vector<4x16xf32>
    %6 = vector.shape_cast %5 : vector<4x16xf32> to vector<1x4x16xf32>
    %c0_6 = arith.constant 0 : index
    %c0_7 = arith.constant 0 : index
    %c0_8 = arith.constant 0 : index
    %7 = vector.load %arg3[%c0_6, %c0_7, %c0_8] : memref<1x4x16xf32, #tpu.memory_space<vmem>>, vector<1x4x16xf32>
    tpu.vector_store %arg3[%c0_6, %c0_7, %c0_8], %6 {strides = array<i32>} : memref<1x4x16xf32, #tpu.memory_space<vmem>>, vector<1x4x16xf32>,
    return
  }
  func.func @transform_0(%arg0: i32) -> (i32, i32, i32) {
    %c0_i32 = arith.constant 0 : i32
    %c0_i32_0 = arith.constant 0 : i32
    %c0_i32_1 = arith.constant 0 : i32
    return %arg0, %c0_i32, %c0_i32_0 : i32, i32, i32
  }
  func.func @transform_1(%arg0: i32) -> (i32, i32, i32, i32) {
    %c5_i32 = arith.constant 5 : i32
    %c0_i32 = arith.constant 0 : i32
    %c0_i32_0 = arith.constant 0 : i32
    %c0_i32_1 = arith.constant 0 : i32
    return %arg0, %c5_i32, %c0_i32, %c0_i32_0 : i32, i32, i32, i32
  }
  func.func @transform_2(%arg0: i32) -> (i32, i32, i32) {
    %c0_i32 = arith.constant 0 : i32
    %c0_i32_0 = arith.constant 0 : i32
    %c0_i32_1 = arith.constant 0 : i32
    return %arg0, %c0_i32, %c0_i32_0 : i32, i32, i32
  }
}

</mosaic_0001>

<bundles_post_ra>
// kernel: tpu_custom_call.1
= control target key start
LH: loop header
LB: loop body
LE: loop exit
PB: predicated region body
PF: predicated region fallthrough
CT: control target
= control target key end

     0   :  { %7 = vsyncpa [#allocation3], 0  ;;  %s175_s0 = inlined_call_operand.hbm [shape: f32[2,4,16], index: 0, kind: input, shape index: {}]   ;;  %s176_s1 = inlined_call_operand.hbm [shape: f32[2,8,4,16], index: 1, kind: input, shape index: {}]   ;;  %s177_s2 = inlined_call_operand.hbm [shape: f32[1,4,16], index: 2, kind: output, shape index: {}]  }
   0x1   :  { %8 = vsyncpa [#allocation6], 0 }
   0x2   :  { %9 = vsyncpa [#allocation4], 0  ;;  %s145_s9 = smov [#allocation2]   ;;  %s27_s13 = scalar_lea.hbm %s176_s1, 320 }
   0x3   :  { %s15_s10 = sshll.u32 %s145_s9, 4  ;;  %s16_s10 = int_to_ptr.vmem [resolvable:$true] %s15_s10 }
   0x4   :  { %s84_s14 = scalar_lea.vmem %s16_s10, 128  ;;  %p89_p1 = scmp.lt.s32.totalorder %s16_s10, %s16_s10 }
   0x5   :  { %p85_p0 = scmp.ne.s32.totalorder %s16_s10, %s84_s14  ;;  %p90_p2 = scmp.lt.s32.totalorder %s84_s14, %s84_s14 }
   0x7   :  { %p91_p3 = por %p90_p2, %p89_p1 }
   0x9   :  { %p92_p4 = pnand %p91_p3, %p85_p0 }
   0xb   :  { %95 = shalt.err (!%p92_p4)
}
   0xc   :  { %s146_s15 = smov 64   ;;  %s147_s16 = smov 4  }
   0xd   :  { %21 = dma.hbm_to_vmem [thread:$0]  %s175_s0, 128, %s16_s10, [#allocation3], %s146_s15, %s146_s15, %s147_s16  }
   0xe   :  { %s148_s19 = smov [#allocation5]  }
   0xf   :  { %s28_s20 = sshll.u32 %s148_s19, 4  ;;  %s29_s20 = int_to_ptr.vmem [resolvable:$true] %s28_s20 }
  0x10   :  { %s106_s21 = scalar_lea.vmem %s29_s20, 128  ;;  %p111_p6 = scmp.lt.s32.totalorder %s29_s20, %s29_s20 }
  0x11   :  { %p107_p5 = scmp.ne.s32.totalorder %s29_s20, %s106_s21  ;;  %p112_p7 = scmp.lt.s32.totalorder %s106_s21, %s106_s21 }
  0x13   :  { %p113_p8 = por %p112_p7, %p111_p6 }
  0x15   :  { %p114_p9 = pnand %p113_p8, %p107_p5 }
  0x17   :  { %117 = shalt.err (!%p114_p9)
}
  0x18   :  { %s149_s1 = smov 512  }
  0x19   :  { %34 = dma.hbm_to_vmem [thread:$0]  %s27_s13, 128, %s29_s20, [#allocation6], %s149_s1, %s146_s15, %s147_s16  }
  0x1a   :  { %139 = dma.done.wait [#allocation3], 128  }
  0x1b   :  { %140 = vsyncadd [#allocation3], 4294967168 }
  0x1c   :  { %141 = dma.done.wait [#allocation6], 128  }
  0x1d   :  { %142 = vsyncadd [#allocation6], 4294967168  ;;  %v41_v0 = vld [vmem:[#allocation2] sm:$0xf]  ;;  %v42_v1 = vld [vmem:[#allocation2 + $0x4] sm:$0xf] }
  0x1e   :  { %v43_v2 = vld [vmem:[#allocation5] sm:$0xf]  ;;  %v44_v3 = vld [vmem:[#allocation5 + $0x4] sm:$0xf]  ;;  %vm49_vm0 = vcmask 125952   ;;  %s150_s0 = smov [#allocation7]  }
  0x1f   :  { %v45_v4 = vsub.f32 %v41_v0, %v43_v2  ;;  %v46_v5 = vsub.f32 %v42_v1, %v44_v3  ;;  %s60_s22 = sshll.u32 %s150_s0, 4  ;;  %s61_s22 = int_to_ptr.vmem [resolvable:$true] %s60_s22 }
  0x20   :  { %s119_s23 = scalar_lea.vmem %s61_s22, 64  ;;  %p124_p11 = scmp.lt.s32.totalorder %s61_s22, %s61_s22 }
  0x21   :  { %v47_v6 = vmul.f32 %v45_v4, %v45_v4  ;;  %v48_v7 = vmul.f32 %v46_v5, %v46_v5  ;;  %p120_p10 = scmp.ne.s32.totalorder %s61_s22, %s119_s23  ;;  %p125_p12 = scmp.lt.s32.totalorder %s119_s23, %s119_s23 }
  0x23   :  { %v50_v8 = vsel %vm49_vm0, %v47_v6, 0.0  ;;  %v51_v9 = vsel %vm49_vm0, %v48_v7, 0.0  ;;  %p126_p13 = por %p125_p12, %p124_p11 }
  0x24   :  { %v52_v10 = vadd.f32 %v51_v9, %v50_v8 }
  0x25   :  { %p127_p0 = pnand %p126_p13, %p120_p10 }
  0x26   :  { %53 = vst.msk [vmem:[#allocation7] sm:$0xf] %vm49_vm0, %v52_v10 }
  0x27   :  { %130 = shalt.err (!%p127_p0)
}
  0x28   :  { %63 = dma.vmem_to_hbm [thread:$0]  %s61_s22, 64, %s177_s2, [#allocation4]  }
  0x29   :  { %143 = dma.done.wait [#allocation4], 64  }
  0x2a   :  { %144 = vsyncadd [#allocation4], 4294967232 }
  0x2b   :  { %67 = vsyncpa [#allocation3], 1 }
  0x2c   :  { %68 = vsyncpa [#allocation6], 1 }
  0x2d   :  { %69 = vsyncpa [#allocation4], 1 }

</bundles_post_ra>
